<compile_context>
chip_gen: v7x
topology: tpu7x:2x2x1
jax: 0.10.0
libtpu: 0.0.40
codegen_flags: <defaults>
</compile_context>

<pallas_src>
import math
import functools

import jax
import jax.numpy as jnp
from jax.experimental import pallas as pl
from jax.experimental.pallas import tpu as pltpu

LANE = 128
SUBLANE_BF16 = 16


def _round_up(x, m):
    return (x + m - 1) // m * m


def _pad2d(a, rows, cols):
    r, c = a.shape
    return jnp.pad(a, ((0, rows - r), (0, cols - c)))


# ----------------------------- Fused kernel --------------------------------

def _fused_forward_kernel(theta_ref,            # SMEM (nlayers,) f32  [scalar prefetch]
                          x_ref,                # (Np, Fp)  bf16
                          adj_ref,              # (Np, Np)  bf16   (resident)
                          w0_ref, b0_ref,       # (Fp, Hp) bf16, (1, Hp) f32
                          convw_ref,            # (1, Hp, Hp) bf16  (layer l slice)
                          w1_ref, b1_ref,       # (Hp, Cp) bf16, (1, Cp) f32
                          out_ref,              # (Np, Cp) f32
                          h_scr, h0_scr,        # VMEM (Np, Hp) f32, persist across layers
                          *, alpha):
    l = pl.program_id(0)
    nlayers = pl.num_programs(0)

    # ---- prologue (layer 0): h = relu(x @ W0 + b0); h0 = h ----------------
    @pl.when(l == 0)
    def _():
        y = jnp.dot(x_ref[...], w0_ref[...], preferred_element_type=jnp.float32)
        h = jnp.maximum(y + b0_ref[...], 0.0)
        h_scr[...] = h
        h0_scr[...] = h

    # ---- GCNII conv layer l (variant=False, residual=True) + ReLU ---------
    h = h_scr[...]                                         # f32, stays in VMEM
    hi = jnp.dot(adj_ref[...], h.astype(jnp.bfloat16),
                 preferred_element_type=jnp.float32)       # adj @ h  (MXU, bf16 in / f32 acc)
    support = (1.0 - alpha) * hi + alpha * h0_scr[...]     # element-wise mix in f32
    theta = theta_ref[l]                                   # per-layer scalar from SMEM
    sw = jnp.dot(support.astype(jnp.bfloat16), convw_ref[0],
                 preferred_element_type=jnp.float32)       # support @ W_l
    out = theta * sw + (1.0 - theta) * support + h         # GCNII mix + residual
    h_scr[...] = jnp.maximum(out, 0.0)                     # ReLU, kept resident

    # ---- epilogue (last layer): logits = h @ W1 + b1 -----------------------
    @pl.when(l == nlayers - 1)
    def _():
        y = jnp.dot(h_scr[...].astype(jnp.bfloat16), w1_ref[...],
                    preferred_element_type=jnp.float32)
        out_ref[...] = (y + b1_ref[...]).astype(out_ref.dtype)


# ------------------------------ Wrapper --------------------------------------

def graphppis_forward(params, x, adj, *, lamda, alpha):
    x = x.astype(jnp.float32)
    adj = adj.astype(jnp.float32)

    n, nfeat = x.shape
    nhidden = params["fc0_w"].shape[1]
    nclass = params["fc1_w"].shape[1]
    nlayers = len(params["conv_w"])
    assert nlayers >= 1

    np_ = _round_up(n, SUBLANE_BF16)       # node dim (sublane axis)
    fp = _round_up(nfeat, LANE)            # lane-dense feature dims
    hp = _round_up(nhidden, LANE)
    cp = _round_up(nclass, LANE)

    # Zero padding: padded weight/bias rows+cols are zero so padded lanes stay
    # zero through every layer; padded node rows never mix into real rows
    # (adj real rows have zero weight on padded columns).
    x_p = _pad2d(x, np_, fp).astype(jnp.bfloat16)
    adj_p = _pad2d(adj, np_, np_).astype(jnp.bfloat16)
    w0_p = _pad2d(params["fc0_w"], fp, hp).astype(jnp.bfloat16)
    b0_p = _pad2d(params["fc0_b"].reshape(1, -1), 1, hp)            # f32
    convw = jnp.stack([_pad2d(w, hp, hp) for w in params["conv_w"]])
    convw = convw.astype(jnp.bfloat16)                              # (L, Hp, Hp)
    w1_p = _pad2d(params["fc1_w"], hp, cp).astype(jnp.bfloat16)
    b1_p = _pad2d(params["fc1_b"].reshape(1, -1), 1, cp)            # f32

    theta = jnp.asarray(
        [min(1.0, math.log(lamda / (i + 1) + 1.0)) for i in range(nlayers)],
        dtype=jnp.float32)

    # Explicit VMEM budget: resident set + double-buffer/compiler slack.
    resident = (x_p.size * 2 + adj_p.size * 2 + w0_p.size * 2 + b0_p.size * 4
                + 2 * hp * hp * 2                       # conv W slice, double-buffered
                + w1_p.size * 2 + b1_p.size * 4
                + np_ * cp * 4                          # output block
                + 2 * np_ * hp * 4)                     # h / h0 scratch
    vmem_limit = int(min(max(3 * resident + (2 << 20), 8 << 20), 48 << 20))

    def full(shape):
        return pl.BlockSpec(shape, lambda l, theta_ref: tuple(0 for _ in shape))

    grid_spec = pltpu.PrefetchScalarGridSpec(
        num_scalar_prefetch=1,
        grid=(nlayers,),
        in_specs=[
            full((np_, fp)),                                        # x
            full((np_, np_)),                                       # adj (resident)
            full((fp, hp)),                                         # W0
            full((1, hp)),                                          # b0
            pl.BlockSpec((1, hp, hp), lambda l, theta_ref: (l, 0, 0)),  # conv W_l
            full((hp, cp)),                                         # W1
            full((1, cp)),                                          # b1
        ],
        out_specs=full((np_, cp)),
        scratch_shapes=[pltpu.VMEM((np_, hp), jnp.float32),
                        pltpu.VMEM((np_, hp), jnp.float32)],
    )

    kern = functools.partial(_fused_forward_kernel, alpha=float(alpha))
    out_p = pl.pallas_call(
        kern,
        out_shape=jax.ShapeDtypeStruct((np_, cp), jnp.float32),
        grid_spec=grid_spec,
        compiler_params=pltpu.CompilerParams(
            dimension_semantics=("arbitrary",),   # layer axis carries scratch state
            vmem_limit_bytes=vmem_limit),
    )(theta, x_p, adj_p, w0_p, b0_p, convw, w1_p, b1_p)

    return out_p[:n, :nclass]


# ------------------------------ Params & references --------------------------

def init_graphppis_params(key, nlayers, nfeat, nhidden, nclass):
    """Deterministic synthetic parameters mirroring the PyTorch __init__ shapes."""
    keys = jax.random.split(key, 2 * nlayers + 4)
    params = {}
    bound0 = 1.0 / math.sqrt(nfeat)
    params["fc0_w"] = jax.random.uniform(keys[0], (nfeat, nhidden),
                                         jnp.float32, -bound0, bound0)
    params["fc0_b"] = jax.random.uniform(keys[1], (nhidden,),
                                         jnp.float32, -bound0, bound0)
    stdv = 1.0 / math.sqrt(nhidden)
    params["conv_w"] = [
        jax.random.uniform(keys[2 + i], (nhidden, nhidden),
                           jnp.float32, -stdv, stdv)
        for i in range(nlayers)
    ]
    bound1 = 1.0 / math.sqrt(nhidden)
    params["fc1_w"] = jax.random.uniform(keys[2 + nlayers], (nhidden, nclass),
                                         jnp.float32, -bound1, bound1)
    params["fc1_b"] = jax.random.uniform(keys[3 + nlayers], (nclass,),
                                         jnp.float32, -bound1, bound1)
    return params


def graphppis_reference_f32(params, x, adj, *, lamda, alpha):
    """Pure-f32 plain-JAX reference (matches PyTorch semantics exactly)."""
    x = x.astype(jnp.float32)
    h = jnp.maximum(x @ params["fc0_w"] + params["fc0_b"], 0.0)
    h0 = h
    for i, w in enumerate(params["conv_w"]):
        theta = min(1.0, math.log(lamda / (i + 1) + 1.0))
        hi = adj @ h
        support = (1.0 - alpha) * hi + alpha * h0
        out = theta * (support @ w) + (1.0 - theta) * support + h
        h = jnp.maximum(out, 0.0)
    return h @ params["fc1_w"] + params["fc1_b"]


def graphppis_reference_bf16(params, x, adj, *, lamda, alpha):
    """Mirrors the kernel exactly: bf16 matmul inputs, f32 accumulation/mixing."""
    def mm(a, b):
        return jnp.dot(a.astype(jnp.bfloat16), b.astype(jnp.bfloat16),
                       preferred_element_type=jnp.float32)
    x = x.astype(jnp.float32)
    h = jnp.maximum(mm(x, params["fc0_w"]) + params["fc0_b"], 0.0)
    h0 = h
    for i, w in enumerate(params["conv_w"]):
        theta = min(1.0, math.log(lamda / (i + 1) + 1.0))
        hi = mm(adj, h)
        support = (1.0 - alpha) * hi + alpha * h0
        out = theta * mm(support, w) + (1.0 - theta) * support + h
        h = jnp.maximum(out, 0.0)
    return mm(h, params["fc1_w"]) + params["fc1_b"]


# ------------------------------- Main ----------------------------------------

if __name__ == "__main__":
    nlayers, nfeat, nhidden, nclass = 2, 16, 32, 2
    lamda, alpha = 0.5, 0.1
    N = 8

    key = jax.random.PRNGKey(0)
    kx, kadj, kparam = jax.random.split(key, 3)

    x = jax.random.normal(kx, (N, nfeat), jnp.float32)
    # Dense normalized adjacency (row-stochastic, symmetric-ish, deterministic).
    a = jax.random.uniform(kadj, (N, N), jnp.float32)
    a = 0.5 * (a + a.T) + jnp.eye(N, dtype=jnp.float32)
    adj = a / jnp.sum(a, axis=1, keepdims=True)

    params = init_graphppis_params(kparam, nlayers, nfeat, nhidden, nclass)

    out = graphppis_forward(params, x, adj, lamda=lamda, alpha=alpha)
    out = jax.block_until_ready(out)

    ref_exact = graphppis_reference_bf16(params, x, adj, lamda=lamda, alpha=alpha)
    ref_f32 = graphppis_reference_f32(params, x, adj, lamda=lamda, alpha=alpha)

    assert out.shape == (N, nclass)
    # Tight check against the bf16-input / f32-accum reference (same math as kernel).
    assert jnp.allclose(out, ref_exact, atol=2e-3, rtol=2e-3), "mismatch vs bf16 reference"
    # Semantic check against the full-f32 PyTorch-equivalent reference.
    assert jnp.allclose(out, ref_f32, atol=1e-1, rtol=1e-1), "mismatch vs f32 reference"

    print("KERNEL_OK")
</pallas_src>

<mosaic_0001>
module attributes {stable_mosaic.version = 11 : i64} {
  func.func @_fused_forward_kernel(%arg0: i32, %arg1: memref<2xf32, #tpu.memory_space<smem>>, %arg2: memref<16x128xbf16, #tpu.memory_space<vmem>>, %arg3: memref<16x16xbf16, #tpu.memory_space<vmem>>, %arg4: memref<128x128xbf16, #tpu.memory_space<vmem>>, %arg5: memref<1x128xf32, #tpu.memory_space<vmem>>, %arg6: memref<1x128x128xbf16, #tpu.memory_space<vmem>>, %arg7: memref<128x128xbf16, #tpu.memory_space<vmem>>, %arg8: memref<1x128xf32, #tpu.memory_space<vmem>>, %arg9: memref<16x128xf32, #tpu.memory_space<vmem>>, %arg10: memref<16x128xf32, #tpu.memory_space<vmem>>, %arg11: memref<16x128xf32, #tpu.memory_space<vmem>>) attributes {dimension_semantics = [#tpu.dimension_semantics<arbitrary>], iteration_bounds = array<i64: 2>, scalar_prefetch = 1 : i64, scratch_operands = 2 : i64, tpu.core_type = #tpu.core_type<tc>, window_params = [{pipeline_mode = #tpu.pipeline_mode<synchronous>, transform_indices = @transform_0, window_bounds = array<i64: 16, 128>}, {pipeline_mode = #tpu.pipeline_mode<synchronous>, transform_indices = @transform_1, window_bounds = array<i64: 16, 16>}, {pipeline_mode = #tpu.pipeline_mode<synchronous>, transform_indices = @transform_2, window_bounds = array<i64: 128, 128>}, {pipeline_mode = #tpu.pipeline_mode<synchronous>, transform_indices = @transform_3, window_bounds = array<i64: 1, 128>}, {transform_indices = @transform_4, window_bounds = array<i64: 1, 128, 128>}, {pipeline_mode = #tpu.pipeline_mode<synchronous>, transform_indices = @transform_5, window_bounds = array<i64: 128, 128>}, {pipeline_mode = #tpu.pipeline_mode<synchronous>, transform_indices = @transform_6, window_bounds = array<i64: 1, 128>}, {pipeline_mode = #tpu.pipeline_mode<synchronous>, transform_indices = @transform_7, window_bounds = array<i64: 16, 128>}]} {
    %c0_i32 = arith.constant 0 : i32
    %0 = arith.cmpi eq, %arg0, %c0_i32 : i32
    %1 = arith.extui %0 : i1 to i32
    %c0_i32_0 = arith.constant 0 : i32
    %2 = arith.cmpi ne, %1, %c0_i32_0 : i32
    scf.if %2 {
      %c0_17 = arith.constant 0 : index
      %c0_18 = arith.constant 0 : index
      %32 = vector.load %arg2[%c0_17, %c0_18] : memref<16x128xbf16, #tpu.memory_space<vmem>>, vector<16x128xbf16>
      %c0_19 = arith.constant 0 : index
      %c0_20 = arith.constant 0 : index
      %33 = vector.load %arg4[%c0_19, %c0_20] : memref<128x128xbf16, #tpu.memory_space<vmem>>, vector<128x128xbf16>
      %cst_21 = arith.constant dense<0.000000e+00> : vector<16x128xf32>
      %34 = tpu.matmul %32, %33, %cst_21 {dimension_numbers = #tpu.dot_dimension_numbers<[1], [0], [0], [1], [0, 0, 1, 1], [], []>} : vector<16x128xbf16>, vector<128x128xbf16>, vector<16x128xf32> -> vector<16x128xf32>
      %c0_22 = arith.constant 0 : index
      %c0_23 = arith.constant 0 : index
      %35 = vector.load %arg5[%c0_22, %c0_23] : memref<1x128xf32, #tpu.memory_space<vmem>>, vector<1x128xf32>
      %36 = vector.broadcast %35 : vector<1x128xf32> to vector<16x128xf32>
      %37 = arith.addf %34, %36 : vector<16x128xf32>
      %cst_24 = arith.constant 0.000000e+00 : f32
      %38 = vector.broadcast %cst_24 : f32 to vector<16x128xf32>
      %39 = arith.maximumf %37, %38 : vector<16x128xf32>
      %c0_25 = arith.constant 0 : index
      %c0_26 = arith.constant 0 : index
      %40 = vector.load %arg10[%c0_25, %c0_26] : memref<16x128xf32, #tpu.memory_space<vmem>>, vector<16x128xf32>
      tpu.vector_store %arg10[%c0_25, %c0_26], %39 {strides = array<i32>} : memref<16x128xf32, #tpu.memory_space<vmem>>, vector<16x128xf32>,
      %c0_27 = arith.constant 0 : index
      %c0_28 = arith.constant 0 : index
      %41 = vector.load %arg11[%c0_27, %c0_28] : memref<16x128xf32, #tpu.memory_space<vmem>>, vector<16x128xf32>
      tpu.vector_store %arg11[%c0_27, %c0_28], %39 {strides = array<i32>} : memref<16x128xf32, #tpu.memory_space<vmem>>, vector<16x128xf32>,
    } else {
    }
    %c0 = arith.constant 0 : index
    %c0_1 = arith.constant 0 : index
    %3 = vector.load %arg10[%c0, %c0_1] : memref<16x128xf32, #tpu.memory_space<vmem>>, vector<16x128xf32>
    %c0_2 = arith.constant 0 : index
    %c0_3 = arith.constant 0 : index
    %4 = vector.load %arg3[%c0_2, %c0_3] : memref<16x16xbf16, #tpu.memory_space<vmem>>, vector<16x16xbf16>
    %5 = arith.truncf %3 : vector<16x128xf32> to vector<16x128xbf16>
    %cst = arith.constant dense<0.000000e+00> : vector<16x128xf32>
    %6 = tpu.matmul %4, %5, %cst {dimension_numbers = #tpu.dot_dimension_numbers<[1], [0], [0], [1], [0, 0, 1, 1], [], []>} : vector<16x16xbf16>, vector<16x128xbf16>, vector<16x128xf32> -> vector<16x128xf32>
    %cst_4 = arith.constant 0.899999976 : f32
    %7 = vector.broadcast %cst_4 : f32 to vector<16x128xf32>
    %8 = arith.mulf %7, %6 : vector<16x128xf32>
    %c0_5 = arith.constant 0 : index
    %c0_6 = arith.constant 0 : index
    %9 = vector.load %arg11[%c0_5, %c0_6] : memref<16x128xf32, #tpu.memory_space<vmem>>, vector<16x128xf32>
    %cst_7 = arith.constant 1.000000e-01 : f32
    %10 = vector.broadcast %cst_7 : f32 to vector<16x128xf32>
    %11 = arith.mulf %10, %9 : vector<16x128xf32>
    %12 = arith.addf %8, %11 : vector<16x128xf32>
    %13 = arith.index_cast %arg0 : i32 to index
    %14 = memref.load %arg1[%13] : memref<2xf32, #tpu.memory_space<smem>>
    %15 = arith.truncf %12 : vector<16x128xf32> to vector<16x128xbf16>
    %c0_8 = arith.constant 0 : index
    %c0_9 = arith.constant 0 : index
    %c0_10 = arith.constant 0 : index
    %16 = vector.load %arg6[%c0_8, %c0_9, %c0_10] : memref<1x128x128xbf16, #tpu.memory_space<vmem>>, vector<1x128x128xbf16>
    %17 = vector.shape_cast %16 : vector<1x128x128xbf16> to vector<128x128xbf16>
    %cst_11 = arith.constant dense<0.000000e+00> : vector<16x128xf32>
    %18 = tpu.matmul %15, %17, %cst_11 {dimension_numbers = #tpu.dot_dimension_numbers<[1], [0], [0], [1], [0, 0, 1, 1], [], []>} : vector<16x128xbf16>, vector<128x128xbf16>, vector<16x128xf32> -> vector<16x128xf32>
    %19 = vector.broadcast %14 : f32 to vector<16x128xf32>
    %20 = arith.mulf %19, %18 : vector<16x128xf32>
    %cst_12 = arith.constant 1.000000e+00 : f32
    %21 = arith.subf %cst_12, %14 : f32
    %22 = vector.broadcast %21 : f32 to vector<16x128xf32>
    %23 = arith.mulf %22, %12 : vector<16x128xf32>
    %24 = arith.addf %20, %23 : vector<16x128xf32>
    %25 = arith.addf %24, %3 : vector<16x128xf32>
    %cst_13 = arith.constant 0.000000e+00 : f32
    %26 = vector.broadcast %cst_13 : f32 to vector<16x128xf32>
    %27 = arith.maximumf %25, %26 : vector<16x128xf32>
    %c0_14 = arith.constant 0 : index
    %c0_15 = arith.constant 0 : index
    %28 = vector.load %arg10[%c0_14, %c0_15] : memref<16x128xf32, #tpu.memory_space<vmem>>, vector<16x128xf32>
    tpu.vector_store %arg10[%c0_14, %c0_15], %27 {strides = array<i32>} : memref<16x128xf32, #tpu.memory_space<vmem>>, vector<16x128xf32>,
    %c1_i32 = arith.constant 1 : i32
    %29 = arith.cmpi eq, %arg0, %c1_i32 : i32
    %30 = arith.extui %29 : i1 to i32
    %c0_i32_16 = arith.constant 0 : i32
    %31 = arith.cmpi ne, %30, %c0_i32_16 : i32
    scf.if %31 {
      %c0_17 = arith.constant 0 : index
      %c0_18 = arith.constant 0 : index
      %32 = vector.load %arg10[%c0_17, %c0_18] : memref<16x128xf32, #tpu.memory_space<vmem>>, vector<16x128xf32>
      %33 = arith.truncf %32 : vector<16x128xf32> to vector<16x128xbf16>
      %c0_19 = arith.constant 0 : index
      %c0_20 = arith.constant 0 : index
      %34 = vector.load %arg7[%c0_19, %c0_20] : memref<128x128xbf16, #tpu.memory_space<vmem>>, vector<128x128xbf16>
      %cst_21 = arith.constant dense<0.000000e+00> : vector<16x128xf32>
      %35 = tpu.matmul %33, %34, %cst_21 {dimension_numbers = #tpu.dot_dimension_numbers<[1], [0], [0], [1], [0, 0, 1, 1], [], []>} : vector<16x128xbf16>, vector<128x128xbf16>, vector<16x128xf32> -> vector<16x128xf32>
      %c0_22 = arith.constant 0 : index
      %c0_23 = arith.constant 0 : index
      %36 = vector.load %arg8[%c0_22, %c0_23] : memref<1x128xf32, #tpu.memory_space<vmem>>, vector<1x128xf32>
      %37 = vector.broadcast %36 : vector<1x128xf32> to vector<16x128xf32>
      %38 = arith.addf %35, %37 : vector<16x128xf32>
      %c0_24 = arith.constant 0 : index
      %c0_25 = arith.constant 0 : index
      %39 = vector.load %arg9[%c0_24, %c0_25] : memref<16x128xf32, #tpu.memory_space<vmem>>, vector<16x128xf32>
      tpu.vector_store %arg9[%c0_24, %c0_25], %38 {strides = array<i32>} : memref<16x128xf32, #tpu.memory_space<vmem>>, vector<16x128xf32>,
    } else {
    }
    return
  }
  func.func @transform_0(%arg0: i32, %arg1: memref<2xf32, #tpu.memory_space<smem>>) -> (i32, i32) {
    %c0_i32 = arith.constant 0 : i32
    %c0_i32_0 = arith.constant 0 : i32
    %c0_i32_1 = arith.constant 0 : i32
    return %c0_i32, %c0_i32_0 : i32, i32
  }
  func.func @transform_1(%arg0: i32, %arg1: memref<2xf32, #tpu.memory_space<smem>>) -> (i32, i32) {
    %c0_i32 = arith.constant 0 : i32
    %c0_i32_0 = arith.constant 0 : i32
    %c0_i32_1 = arith.constant 0 : i32
    return %c0_i32, %c0_i32_0 : i32, i32
  }
  func.func @transform_2(%arg0: i32, %arg1: memref<2xf32, #tpu.memory_space<smem>>) -> (i32, i32) {
    %c0_i32 = arith.constant 0 : i32
    %c0_i32_0 = arith.constant 0 : i32
    %c0_i32_1 = arith.constant 0 : i32
    return %c0_i32, %c0_i32_0 : i32, i32
  }
  func.func @transform_3(%arg0: i32, %arg1: memref<2xf32, #tpu.memory_space<smem>>) -> (i32, i32) {
    %c0_i32 = arith.constant 0 : i32
    %c0_i32_0 = arith.constant 0 : i32
    %c0_i32_1 = arith.constant 0 : i32
    return %c0_i32, %c0_i32_0 : i32, i32
  }
  func.func @transform_4(%arg0: i32, %arg1: memref<2xf32, #tpu.memory_space<smem>>) -> (i32, i32, i32) {
    %c0_i32 = arith.constant 0 : i32
    %c0_i32_0 = arith.constant 0 : i32
    %c0_i32_1 = arith.constant 0 : i32
    return %arg0, %c0_i32, %c0_i32_0 : i32, i32, i32
  }
  func.func @transform_5(%arg0: i32, %arg1: memref<2xf32, #tpu.memory_space<smem>>) -> (i32, i32) {
    %c0_i32 = arith.constant 0 : i32
    %c0_i32_0 = arith.constant 0 : i32
    %c0_i32_1 = arith.constant 0 : i32
    return %c0_i32, %c0_i32_0 : i32, i32
  }
  func.func @transform_6(%arg0: i32, %arg1: memref<2xf32, #tpu.memory_space<smem>>) -> (i32, i32) {
    %c0_i32 = arith.constant 0 : i32
    %c0_i32_0 = arith.constant 0 : i32
    %c0_i32_1 = arith.constant 0 : i32
    return %c0_i32, %c0_i32_0 : i32, i32
  }
  func.func @transform_7(%arg0: i32, %arg1: memref<2xf32, #tpu.memory_space<smem>>) -> (i32, i32) {
    %c0_i32 = arith.constant 0 : i32
    %c0_i32_0 = arith.constant 0 : i32
    %c0_i32_1 = arith.constant 0 : i32
    return %c0_i32, %c0_i32_0 : i32, i32
  }
}

</mosaic_0001>

<bundles_post_ra>
// kernel: tpu_custom_call.1
= control target key start
LH: loop header
LB: loop body
LE: loop exit
PB: predicated region body
PF: predicated region fallthrough
CT: control target
= control target key end

     0   :  { %s1754_s0 = inlined_call_operand.hbm [shape: f32[2], index: 0, kind: input, shape index: {}]   ;;  %s1755_s1 = inlined_call_operand.hbm [shape: bf16[16,128], index: 1, kind: input, shape index: {}]   ;;  %s1756_s2 = inlined_call_operand.hbm [shape: bf16[16,16], index: 2, kind: input, shape index: {}]   ;;  %s1757_s3 = inlined_call_operand.hbm [shape: bf16[128,128], index: 3, kind: input, shape index: {}]   ;;  %s1758_s4 = inlined_call_operand.vmem [shape: f32[1,128], index: 4, kind: input, shape index: {}]   ;;  %s1759_s5 = inlined_call_operand.hbm [shape: bf16[2,128,128], index: 5, kind: input, shape index: {}]   ;;  %s1760_s6 = inlined_call_operand.hbm [shape: bf16[128,128], index: 6, kind: input, shape index: {}]   ;;  %s1761_s7 = inlined_call_operand.vmem [shape: f32[1,128], index: 7, kind: input, shape index: {}]   ;;  %s1762_s8 = inlined_call_operand.hbm [shape: f32[16,128], index: 8, kind: output, shape index: {}]  }
   0x1   :  { %s1155_s29 = scalar_lea.hbm %s1754_s0, 16 }
   0x2   :  { %p1156_p0 = scmp.ne.s32.totalorder %s1754_s0, %s1155_s29  ;;  %p1159_p1 = scmp.lt.u32.totalorder %s1155_s29, %s1754_s0 }
   0x4   :  { %p1161_p2 = pnand %p1159_p1, %p1156_p0 }
   0x6   :  { %1164 = shalt.err (!%p1161_p2)  }
   0x7   :  { %s1387_s12 = smov [#allocation5]  }
   0x8   :  { %14 = dma.hbm_to_smem %s1754_s0, 16, %s1387_s12, [#allocation4] }
   0x9   :  { %1349 = dma.done.wait [#allocation4], 16 }
   0xa   :  { %1350 = vsyncadd [#allocation4], 4294967280 }
   0xb   :  { %16 = sfence }
   0xc   :  { %17 = vsyncpa [#allocation7], 0 }
   0xd   :  { %18 = vsyncpa [#allocation10], 0 }
   0xe   :  { %19 = vsyncpa [#allocation13], 0 }
   0xf   :  { %21 = vsyncpa [#allocation13 + $0x1], 0 }
  0x10   :  { %22 = vsyncpa [#allocation8], 0  ;;  %s1461_s15 = smov 0   ;;  %s1463_s16 = smov 0  }
  0x11   :  { %s1465_s17 = smov 0   ;;  %s1467_s18 = smov 0  }
  0x12 LB: > { %s1480_s0 = sadd.s32 4294967295, %s1385_s18   ;;  %p132_p3 = scmp.ne.s32.totalorder %s1377_s16, %s1373_s15  ;;  %s1385_s18 = sphi %s1467_s18, %s1783_s18   ;;  %s1381_s17 = sphi %s1465_s17, %s1782_s17   ;;  %s1377_s16 = sphi %s1463_s16, %s1781_s16   ;;  %s1373_s15 = sphi %s1461_s15, %s1780_s15  }
  0x13   : > { %p1763_p4 = scmp.eq.s32.totalorder %s1480_s0, 0  ;;  %p885_p5 = scmp.ge.s32.totalorder %s1385_s18, 1 }
  0x14   : > { %p206_p6 = scmp.lt.s32.totalorder %s1385_s18, 3  ;;  %s1388_s21 = smov [#allocation9]  }
  0x15   : > { %p1489_p8 = por %p1763_p4, %p132_p3  ;;  %s231_s22 = sshll.u32 %s1388_s21, 4  ;;  %s1499_s22 = int_to_ptr.vmem [resolvable:$true] %s231_s22 }
  0x16   : > { %p1493_p9 = pnand %p885_p5, %p206_p6  ;;  %s1389_s24 = smov [#allocation14]  }
  0x17   : > { %s1766_s19 = scalar_select %p1489_p8, 1, 0 }
  0x18   : > { %s1767_s20 = scalar_select %p1493_p9, 1, 0 }
  0x19   : > { %p1053_p10 = pneg %p1493_p9  ;;  %s260_s25 = sshll.u32 %s1389_s24, 4  ;;  %s1507_s25 = int_to_ptr.vmem [resolvable:$true] %s260_s25 }
  0x1a   : > { %s1390_s26 = smov [#allocation6]   ;;  %s1165_s30 = scalar_lea.hbm %s1756_s2, 128 }
  0x1b   : > { %p1503_p11 = pnand %p1053_p10, %p1763_p4  ;;  %s1509_s27 = sshll.u32 %s1390_s26, 4  ;;  %s219_s27 = int_to_ptr.vmem [resolvable:$true] %s1509_s27 }
  0x1c   : > { %p1166_p12 = scmp.ne.s32.totalorder %s1756_s2, %s1165_s30  ;;  %p1172_p2 = scmp.lt.u32.totalorder %s1165_s30, %s1756_s2 }
  0x1d   : > { %p1519_p13 = pneg %p1503_p11 }
  0x1f   : > { %p1168_p0 = pnand %p1519_p13, %p1166_p12 }
  0x21   : > { %p1169_p1 = pneg %p1168_p0 }
  0x23   : > { %p1174_p3 = pnand %p1172_p2, %p1169_p1 }
  0x25   : > { %1177 = shalt.err (!%p1174_p3)
}
  0x26   : > { %s1178_s14 = scalar_lea.vmem %s1499_s22, 128  ;;  %p1186_p7 = scmp.lt.s32.totalorder %s1499_s22, %s1499_s22 }
  0x27   : > { %p1179_p5 = scmp.ne.s32.totalorder %s1499_s22, %s1178_s14  ;;  %p1187_p4 = scmp.lt.s32.totalorder %s1178_s14, %s1178_s14 }
  0x29   : > { %p1181_p6 = pnand %p1179_p5, %p1519_p13  ;;  %p1188_p12 = por %p1187_p4, %p1186_p7 }
  0x2b   : > { %p1182_p10 = pneg %p1181_p6 }
  0x2d   : > { %p1189_p0 = pnand %p1188_p12, %p1182_p10 }
  0x2f   : > { %1192 = shalt.err (!%p1189_p0)
}
  0x30   : > { %s1391_s15 = smov 64   ;;  %s1392_s21 = smov 4  }
  0x31   : > { %1059 = dma.hbm_to_vmem [thread:$0]  (!%p1503_p11), %s1756_s2, 128, %s1499_s22, [#allocation10], %s1391_s15, %s1391_s15, %s1392_s21  }
  0x32   : > { %s1193_s30 = scalar_lea.hbm %s1760_s6, 1024 }
  0x33   : > { %p1194_p4 = scmp.ne.s32.totalorder %s1760_s6, %s1193_s30  ;;  %p1200_p2 = scmp.lt.u32.totalorder %s1193_s30, %s1760_s6 }
  0x35   : > { %p1196_p7 = pnand %p1194_p4, %p1519_p13 }
  0x37   : > { %p1197_p1 = pneg %p1196_p7 }
  0x39   : > { %p1202_p3 = pnand %p1200_p2, %p1197_p1 }
  0x3b   : > { %1205 = shalt.err (!%p1202_p3)
}
  0x3c   : > { %s1206_s22 = scalar_lea.vmem %s1507_s25, 1024  ;;  %p1214_p12 = scmp.lt.s32.totalorder %s1507_s25, %s1507_s25 }
  0x3d   : > { %p1207_p5 = scmp.ne.s32.totalorder %s1507_s25, %s1206_s22  ;;  %p1215_p0 = scmp.lt.s32.totalorder %s1206_s22, %s1206_s22 }
  0x3f   : > { %p1209_p6 = pnand %p1207_p5, %p1519_p13  ;;  %p1216_p4 = por %p1215_p0, %p1214_p12 }
  0x41   : > { %p1210_p10 = pneg %p1209_p6 }
  0x43   : > { %p1217_p7 = pnand %p1216_p4, %p1210_p10 }
  0x45   : > { %1220 = shalt.err (!%p1217_p7)
}
  0x46   : > { %1065 = dma.hbm_to_vmem [thread:$0]  (!%p1503_p11), %s1760_s6, 1024, %s1507_s25, [#allocation13], %s1391_s15, %s1391_s15, %s1392_s21  }
  0x47   : > { %s1221_s29 = scalar_lea.hbm %s1755_s1, 128 }
  0x48   : > { %p1222_p1 = scmp.ne.s32.totalorder %s1755_s1, %s1221_s29  ;;  %p1228_p5 = scmp.lt.u32.totalorder %s1221_s29, %s1755_s1 }
  0x4a   : > { %p1224_p2 = pnand %p1222_p1, %p1519_p13 }
  0x4c   : > { %p1225_p3 = pneg %p1224_p2 }
  0x4e   : > { %p1230_p6 = pnand %p1228_p5, %p1225_p3 }
  0x50   : > { %1233 = shalt.err (!%p1230_p6)
}
  0x51   : > { %s1234_s13 = scalar_lea.vmem %s219_s27, 128  ;;  %p1242_p4 = scmp.lt.s32.totalorder %s219_s27, %s219_s27 }
  0x52   : > { %p1235_p10 = scmp.ne.s32.totalorder %s219_s27, %s1234_s13  ;;  %p1243_p7 = scmp.lt.s32.totalorder %s1234_s13, %s1234_s13 }
  0x54   : > { %p1237_p12 = pnand %p1235_p10, %p1519_p13  ;;  %p1244_p8 = por %p1243_p7, %p1242_p4 }
  0x56   : > { %p1238_p0 = pneg %p1237_p12 }
  0x58   : > { %p1245_p9 = pnand %p1244_p8, %p1238_p0 }
  0x5a   : > { %1248 = shalt.err (!%p1245_p9)
}
  0x5b   : > { %1056 = dma.hbm_to_vmem [thread:$0]  (!%p1503_p11), %s1755_s1, 128, %s219_s27, [#allocation7], %s1391_s15, %s1391_s15, %s1392_s21  }
  0x5c   : > { %s1393_s14 = smov [#allocation11]   ;;  %s1249_s29 = scalar_lea.hbm %s1757_s3, 1024 }
  0x5d   : > { %s244_s24 = sshll.u32 %s1393_s14, 4  ;;  %p1250_p8 = scmp.ne.s32.totalorder %s1757_s3, %s1249_s29  ;;  %s245_s24 = int_to_ptr.vmem [resolvable:$true] %s244_s24 }
  0x5e   : > { %p1256_p2 = scmp.lt.u32.totalorder %s1249_s29, %s1757_s3 }
  0x5f   : > { %p1252_p9 = pnand %p1250_p8, %p1519_p13 }
  0x61   : > { %p1253_p1 = pneg %p1252_p9 }
  0x63   : > { %p1258_p3 = pnand %p1256_p2, %p1253_p1 }
  0x65   : > { %1261 = shalt.err (!%p1258_p3)
}
  0x66   : > { %s1262_s27 = scalar_lea.vmem %s245_s24, 1024  ;;  %p1270_p12 = scmp.lt.s32.totalorder %s245_s24, %s245_s24 }
  0x67   : > { %p1263_p5 = scmp.ne.s32.totalorder %s245_s24, %s1262_s27  ;;  %p1271_p0 = scmp.lt.s32.totalorder %s1262_s27, %s1262_s27 }
  0x69   : > { %p1265_p6 = pnand %p1263_p5, %p1519_p13  ;;  %p1272_p4 = por %p1271_p0, %p1270_p12 }
  0x6b   : > { %p1266_p10 = pneg %p1265_p6 }
  0x6d   : > { %p1273_p7 = pnand %p1272_p4, %p1266_p10 }
  0x6f   : > { %1276 = shalt.err (!%p1273_p7)
}
  0x70   : > { %1062 = dma.hbm_to_vmem [thread:$0]  (!%p1503_p11), %s1757_s3, 1024, %s245_s24, [#allocation10], %s1391_s15, %s1391_s15, %s1392_s21  }
  0x71   : > { %s1613_s11 = sadd.s32 1, %s1385_s18   ;;  %s119_s23 = sadd.s32 1, %s1381_s17 }
  0x72   : > { %s116_s22 = ssub.s32 %s1385_s18, %s1613_s11  ;;  %p126_p13 = scmp.ne.s32.totalorder %s1381_s17, %s1377_s16 }
  0x73   : > { %p117_p8 = scmp.eq.s32.totalorder %s116_s22, 0  ;;  %p127_p9 = scmp.eq.s32.totalorder %s1385_s18, 0 }
  0x74   : > { %p1074_p1 = scmp.lt.s32.totalorder %s1385_s18, 2  ;;  %s277_s14 = sand.u32 1, %s1385_s18  }
  0x75   : > { %s1624_s26 = scalar_select %p117_p8, %s1381_s17, %s119_s23  }
  0x76   : > { %p128_p2 = por %p127_p9, %p126_p13  ;;  %s279_s28 = sand.u32 1, %s1381_s17  }
  0x77   : > { %s935_s29 = sshll.u32 %s1385_s18, 10  ;;  %s891_s30 = sshll.u32 %s279_s28, 6 }
  0x78   : > { %s1631_s24 = scalar_lea.hbm %s1759_s5, %s935_s29  ;;  %p1633_p11 = pnand %p1074_p1, %p128_p2 }
  0x79   : > { %s281_s27 = scalar_lea.vmem [#allocation12], %s891_s30  ;;  %s1639_s18 = scalar_lea.sflag [#allocation13], %s277_s14 }
  0x7a   : > { %s288_s13 = sshll.u32 %s281_s27, 4  ;;  %s1277_s25 = scalar_lea.hbm %s1631_s24, 1024  ;;  %s1637_s13 = int_to_ptr.vmem [resolvable:$true] %s288_s13 }
  0x7b   : > { %p1278_p3 = scmp.ne.s32.totalorder %s1631_s24, %s1277_s25  ;;  %p1279_p5 = pneg %p1633_p11 }
  0x7c   : > { %s1282_s28 = scalar_lea.hbm %s1759_s5, 2048  ;;  %p1283_p12 = scmp.lt.u32.totalorder %s1631_s24, %s1759_s5 }
  0x7d   : > { %p1280_p6 = pnand %p1279_p5, %p1278_p3  ;;  %p1284_p0 = scmp.lt.u32.totalorder %s1282_s28, %s1277_s25 }
  0x7e   : > { %p1286_p7 = scmp.lt.u32.totalorder %s1277_s25, %s1631_s24 }
  0x7f   : > { %p1281_p10 = pneg %p1280_p6  ;;  %p1285_p4 = por %p1284_p0, %p1283_p12 }
  0x81   : > { %p1287_p13 = por %p1286_p7, %p1285_p4 }
  0x83   : > { %p1288_p8 = pnand %p1287_p13, %p1281_p10 }
  0x85   : > { %1291 = shalt.err (!%p1288_p8)
}
  0x86   : > { %s1292_s14 = scalar_lea.vmem %s1637_s13, 1024  ;;  %s1394_s30 = smov [#allocation12]  }
  0x87   : > { %p1293_p9 = scmp.ne.s32.totalorder %s1637_s13, %s1292_s14  ;;  %s1297_s10 = sshll.u32 %s1394_s30, 4  ;;  %s1298_s10 = int_to_ptr.vmem [resolvable:$false] %s1297_s10 }
  0x88   : > { %s1299_s27 = scalar_lea.vmem %s1298_s10, 2048  ;;  %p1300_p3 = scmp.lt.s32.totalorder %s1637_s13, %s1298_s10 }
  0x89   : > { %p1295_p1 = pnand %p1293_p9, %p1279_p5  ;;  %p1301_p6 = scmp.lt.s32.totalorder %s1299_s27, %s1292_s14 }
  0x8b   : > { %p1296_p2 = pneg %p1295_p1  ;;  %p1302_p12 = por %p1301_p6, %p1300_p3 }
  0x8d   : > { %p1303_p0 = pnand %p1302_p12, %p1296_p2 }
  0x8f   : > { %1306 = shalt.err (!%p1303_p0)
}
  0x90   : > { %1069 = dma.hbm_to_vmem [thread:$0]  (!%p1633_p11), %s1631_s24, 1024, %s1637_s13, %s1639_s18, %s1391_s15, %s1391_s15, %s1392_s21  }
  0x91   : > { %p1771_p5 = scmp.ne.s32.totalorder %s1767_s20, 0 }
  0x92   : > { %p1772_p10 = scmp.eq.s32.totalorder (!%p1771_p5), %s1480_s0, 0 }
  0x93   : > { %300 = sbr.rel (%p1771_p5) target bundleno = 1127 (0x467), region = 48 }
  0x9a   : > { %1352 = dma.done.wait (%p1772_p10), [#allocation7], 128   ;;  %p1773_p4 = pmov %p1772_p10 }
  0x9c   : > { %1354 = vsyncadd (%p1773_p4), [#allocation7], 4294967168  ;;  %p1774_p7 = pmov %p1773_p4 }
  0x9d   : > { %p1775_p13 = pmov %p1773_p4 }
  0x9e   : > { %1356 = dma.done.wait (%p1774_p7), [#allocation10], 1152  }
  0x9f   : > { %1358 = vsyncadd (%p1775_p13), [#allocation10], 4294966144  ;;  %s314_s12 = sand.u32 1, %s1480_s0   ;;  %s316_s15 = sand.u32 1, %s1377_s16  }
  0xa0   : > { %s898_s21 = sshll.u32 %s316_s15, 6  ;;  %s315_s20 = scalar_lea.sflag [#allocation13], %s314_s12 }
  0xa1   : > { %s1682_s24 = scalar_lea.vmem [#allocation12], %s898_s21  ;;  %p1776_p11 = scmp.ne.s32.totalorder %s1766_s19, 0 }
  0xa3   : > { %1360 = dma.done.wait (%p1776_p11), %s315_s20, 1024  }
  0xa4   : > { %1362 = vsyncadd (%p1776_p11), %s315_s20, 4294966272  ;;  %p1777_p8 = pmov %p1773_p4 }
  0xa5   : > { %p1778_p9 = pmov %p1773_p4 }
  0xa6   : > { %1364 = dma.done.wait (%p1777_p8), [#allocation13], 1024  }
  0xa7   : > { %1366 = vsyncadd (%p1778_p9), [#allocation13], 4294966272  ;;  %p1779_p1 = scmp.ne.s32.totalorder %s1480_s0, 0 }
  0xa8   : > { %v1129_v0 = vld [vmem:[#allocation11] sm:$0xff] (!%p1779_p1)   ;;  %v1395_v1 = vmov (!%p1779_p1), 0.0   ;;  %v1130_v2 = vld [vmem:[#allocation11 + $0x8] sm:$0xff] (!%p1779_p1)   ;;  %vm1396_vm0 = vmmov (!%p1779_p1), 0   ;;  %v1131_v3 = vld [vmem:[#allocation11 + $0x10] sm:$0xff] (!%p1779_p1)  }
  0xa9   : > { %352 = sbr.rel (%p1779_p1) target bundleno = 420 (0x1a4), region = 72  ;;  %965 = vmatprep.subr.bf16.mxu0 (!%p1779_p1), %v1395_v1  ;;  %981 = vmatprep.mubr.msk.bf16.mxu0 (!%p1779_p1), %vm1396_vm0, %v1395_v1  ;;  %v1132_v4 = vld [vmem:[#allocation11 + $0x18] sm:$0xff] (!%p1779_p1)   ;;  %v1133_v5 = vld [vmem:[#allocation11 + $0x20] sm:$0xff] (!%p1779_p1)   ;;  %v1134_v6 = vld [vmem:[#allocation11 + $0x28] sm:$0xff] (!%p1779_p1)  }
  0xaa   : > { %966 = vmatpush3.bf16.msra.mxu0 (!%p1779_p1), %v1129_v0  ;;  %v1135_v7 = vld [vmem:[#allocation11 + $0x30] sm:$0xff] (!%p1779_p1)   ;;  %v1136_v8 = vld [vmem:[#allocation11 + $0x38] sm:$0xff] (!%p1779_p1)  }
  0xab   : > { %967 = vmatprep.subr.bf16.mxu0 (!%p1779_p1), %v1395_v1  ;;  %v1137_v9 = vld [vmem:[#allocation6] sm:$0xff] (!%p1779_p1)  }
  0xac   : > { %v901_v10 = vld [vmem:[%s1758_s4] ss:$0 sm:$0xff] (!%p1779_p1) }
  0xae   : > { %968 = vmatpush3.bf16.msra.mxu0 (!%p1779_p1), %v1130_v2 }
  0xaf   : > { %969 = vmatprep.subr.bf16.mxu0 (!%p1779_p1), %v1395_v1 }
  0xb2   : > { %970 = vmatpush3.bf16.msra.mxu0 %v1131_v3 }
  0xb3   : > { %971 = vmatprep.subr.bf16.mxu0 %v1395_v1 }
  0xb6   : > { %972 = vmatpush3.bf16.msra.mxu0 %v1132_v4 }
  0xb7   : > { %973 = vmatprep.subr.bf16.mxu0 %v1395_v1 }
  0xba   : > { %974 = vmatpush3.bf16.msra.mxu0 %v1133_v5 }
  0xbb   : > { %975 = vmatprep.subr.bf16.mxu0 %v1395_v1 }
  0xbe   : > { %976 = vmatpush3.bf16.msra.mxu0 %v1134_v6 }
  0xbf   : > { %977 = vmatprep.subr.bf16.mxu0 %v1395_v1 }
  0xc2   : > { %978 = vmatpush3.bf16.msra.mxu0 %v1135_v7 }
  0xc3   : > { %979 = vmatprep.subr.bf16.mxu0 %v1395_v1 }
  0xc6   : > { %980 = vmatpush3.bf16.msra.mxu0 %v1136_v8 }
  0xc9   : > { %982 = vmatmul.mubr.bf16.vlgmr.msra.gmra.mrb[0].mxu0 %v1137_v9 }
 0x19c   : > { %v466_v11 = vpop.f32.mrb[0].mxu0 }
 0x19d   : > { %v467_v12 = vadd.f32 %v901_v10, %v466_v11  ;;  %v983_v13 = vpop.f32.mrb[1].mxu0 }
 0x19e   : > { %v469_v14 = vpop.f32.mrb[2].mxu0 }
 0x19f   : > { %v473_v15 = vmax.f32 %v467_v12, 0.0  ;;  %v470_v16 = vadd.f32 %v901_v10, %v469_v14  ;;  %v984_v17 = vpop.f32.mrb[3].mxu0 }
 0x1a1   : > { %475 = vst [vmem:[#allocation2] sm:$0xff] %v473_v15  ;;  %477 = vst [vmem:[#allocation3] sm:$0xff] %v473_v15  ;;  %v474_v18 = vmax.f32 %v470_v16, 0.0 }
 0x1a3   : > { %476 = vst [vmem:[#allocation2 + $0x8] sm:$0xff] %v474_v18  ;;  %478 = vst [vmem:[#allocation3 + $0x8] sm:$0xff] %v474_v18 }
 0x1a4 PF: > { %v1397_v21 = vmov 0.0   ;;  %vm1398_vm1 = vmmov 0   ;;  %v1138_v23 = vld [vmem:[#allocation9] sm:$0xff]   ;;  %v1139_v24 = vld [vmem:[%s1682_s24] sm:$0xff]   ;;  %vm489_vm2 = vcmask 130048   ;;  %v1140_v25 = vld [vmem:[%s1682_s24 + $0x8] sm:$0xff]  }
 0x1a5   : > { %985 = vmatprep.subr.bf16.mxu0 %v1397_v21  ;;  %987 = vmatprep.mubr.msk.bf16.mxu0 %vm1398_vm1, %v1397_v21  ;;  %v1141_v26 = vld [vmem:[%s1682_s24 + $0x10] sm:$0xff]   ;;  %v1142_v27 = vld [vmem:[%s1682_s24 + $0x18] sm:$0xff]   ;;  %v1143_v28 = vld [vmem:[%s1682_s24 + $0x20] sm:$0xff]   ;;  %s542_s18 = sld [smem:[#allocation5 + %s1480_s0]]  ;;  %p921_p2 = scmp.ne.s32.totalorder %s1480_s0, 1 }
 0x1a6   : > { %991 = vmatprep.subr.bf16.mxu1 %v1397_v21  ;;  %1007 = vmatprep.mubr.msk.bf16.mxu1 %vm1398_vm1, %v1397_v21  ;;  %v1144_v29 = vld [vmem:[%s1682_s24 + $0x28] sm:$0xff]   ;;  %v1145_v30 = vld [vmem:[%s1682_s24 + $0x30] sm:$0xff]   ;;  %v1146_v31 = vld [vmem:[%s1682_s24 + $0x38] sm:$0xff]   ;;  %v1399_v62 = vmov (!%p921_p2), 0.0   ;;  %vm1400_vm3 = vmmov (!%p921_p2), 0  }
 0x1a7   : > { %992 = vmatpush3.bf16.msra.mxu1 %v1139_v24  ;;  %v1147_v61 = vld [vmem:[#allocation14] sm:$0xff] (!%p921_p2)   ;;  %v1148_v63 = vld [vmem:[#allocation14 + $0x8] sm:$0xff] (!%p921_p2)   ;;  %v1149_v0 = vld [vmem:[#allocation14 + $0x10] sm:$0xff] (!%p921_p2)  }
 0x1a8   : > { %v1697_v19 = vld [vmem:[#allocation2] sm:$0xff]  ;;  %993 = vmatprep.subr.bf16.mxu1 %v1397_v21  ;;  %v536_v32 = vld [vmem:[#allocation3] sm:$0xff]  ;;  %v1150_v1 = vld [vmem:[#allocation14 + $0x18] sm:$0xff] (!%p921_p2)  }
 0x1a9   : > { %v538_v35 = vmul.f32 0.1, %v536_v32  ;;  %v1151_v2 = vld [vmem:[#allocation14 + $0x20] sm:$0xff] (!%p921_p2)   ;;  %v1152_v3 = vld [vmem:[#allocation14 + $0x28] sm:$0xff] (!%p921_p2)   ;;  %v1153_v4 = vld [vmem:[#allocation14 + $0x30] sm:$0xff] (!%p921_p2)  }
 0x1aa   : > { %v1699_v20 = vld [vmem:[#allocation2 + $0x8] sm:$0xff]  ;;  %v537_v33 = vld [vmem:[#allocation3 + $0x8] sm:$0xff]  ;;  %v922_v9 = vld [vmem:[%s1761_s7] ss:$0 sm:$0xff] (!%p921_p2) }
 0x1ab   : > { %v483_v22 = vpack.c.bf16 %v1699_v20, %v1697_v19  ;;  %994 = vmatpush3.bf16.msra.mxu1 %v1140_v25  ;;  %v539_v38 = vmul.f32 0.1, %v537_v33  ;;  %s652_s25 = ssub.f32 1.0, %s542_s18  ;;  %v649_v45 = vstv %s542_s18  ;;  %v1154_v5 = vld [vmem:[#allocation14 + $0x38] sm:$0xff] (!%p921_p2)  }
 0x1ac   : > { %995 = vmatprep.subr.bf16.mxu1 %v1397_v21 }
 0x1ad   : > { %986 = vmatpush3.bf16.msra.mxu0 %v483_v22  ;;  %v653_v46 = vstv %s652_s25 }
 0x1ae   : > { %1011 = vmatprep.subr.bf16.mxu0 (!%p921_p2), %v1399_v62 }
 0x1af   : > { %996 = vmatpush3.bf16.msra.mxu1 %v1141_v26 }
 0x1b0   : > { %988 = vmatmul.mubr.msk.bf16.vlgmr.msra.gmra.mrb[0].mxu0 %vm489_vm2, %v1138_v23  ;;  %997 = vmatprep.subr.bf16.mxu1 %v1397_v21 }
 0x1b1   : > { %1012 = vmatpush3.bf16.msra.mxu0 (!%p921_p2), %v1147_v61  ;;  %1027 = vmatprep.mubr.msk.bf16.mxu0 (!%p921_p2), %vm1400_vm3, %v1399_v62 }
 0x1b2   : > { %1013 = vmatprep.subr.bf16.mxu0 (!%p921_p2), %v1399_v62 }
 0x1b3   : > { %998 = vmatpush3.bf16.msra.mxu1 %v1142_v27 }
 0x1b4   : > { %999 = vmatprep.subr.bf16.mxu1 %v1397_v21 }
 0x1b5   : > { %1014 = vmatpush3.bf16.msra.mxu0 (!%p921_p2), %v1148_v63 }
 0x1b6   : > { %1015 = vmatprep.subr.bf16.mxu0 (!%p921_p2), %v1399_v62 }
 0x1b7   : > { %1000 = vmatpush3.bf16.msra.mxu1 %v1143_v28 }
 0x1b8   : > { %1001 = vmatprep.subr.bf16.mxu1 %v1397_v21 }
 0x1b9   : > { %1016 = vmatpush3.bf16.msra.mxu0 (!%p921_p2), %v1149_v0 }
 0x1ba   : > { %1017 = vmatprep.subr.bf16.mxu0 (!%p921_p2), %v1399_v62 }
 0x1bb   : > { %1002 = vmatpush3.bf16.msra.mxu1 %v1144_v29 }
 0x1bc   : > { %1003 = vmatprep.subr.bf16.mxu1 %v1397_v21 }
 0x1bd   : > { %1018 = vmatpush3.bf16.msra.mxu0 (!%p921_p2), %v1150_v1 }
 0x1be   : > { %1019 = vmatprep.subr.bf16.mxu0 (!%p921_p2), %v1399_v62 }
 0x1bf   : > { %1004 = vmatpush3.bf16.msra.mxu1 %v1145_v30 }
 0x1c0   : > { %1005 = vmatprep.subr.bf16.mxu1 %v1397_v21 }
 0x1c1   : > { %1020 = vmatpush3.bf16.msra.mxu0 (!%p921_p2), %v1151_v2 }
 0x1c2   : > { %1021 = vmatprep.subr.bf16.mxu0 (!%p921_p2), %v1399_v62 }
 0x1c3   : > { %1006 = vmatpush3.bf16.msra.mxu1 %v1146_v31 }
 0x1c5   : > { %1022 = vmatpush3.bf16.msra.mxu0 (!%p921_p2), %v1152_v3 }
 0x1c6   : > { %1023 = vmatprep.subr.bf16.mxu0 (!%p921_p2), %v1399_v62 }
 0x1c9   : > { %1024 = vmatpush3.bf16.msra.mxu0 (!%p921_p2), %v1153_v4 }
 0x1ca   : > { %1025 = vmatprep.subr.bf16.mxu0 (!%p921_p2), %v1399_v62 }
 0x1cd   : > { %1026 = vmatpush3.bf16.msra.mxu0 (!%p921_p2), %v1154_v5 }
 0x283   : > { %v527_v34 = vpop.f32.mrb[0].mxu0 }
 0x284   : > { %v534_v36 = vmul.f32 0.9, %v527_v34  ;;  %v989_v37 = vpop.f32.mrb[1].mxu0 }
 0x285   : > { %v530_v39 = vpop.f32.mrb[2].mxu0 }
 0x286   : > { %v535_v40 = vmul.f32 0.9, %v530_v39  ;;  %v990_v41 = vpop.f32.mrb[3].mxu0  ;;  %v540_v42 = vadd.f32 %v538_v35, %v534_v36 }
 0x288   : > { %v541_v43 = vadd.f32 %v539_v38, %v535_v40  ;;  %v654_v49 = vmul.f32 %v653_v46, %v540_v42 }
 0x28a   : > { %v543_v44 = vpack.c.bf16 %v541_v43, %v540_v42  ;;  %v655_v54 = vmul.f32 %v653_v46, %v541_v43 }
 0x28c   : > { %1008 = vmatmul.mubr.bf16.vlgmr.msra.gmra.mrb[0].mxu1 %v543_v44 }
 0x35f   : > { %v642_v47 = vpop.f32.mrb[0].mxu1 }
 0x360   : > { %v650_v48 = vmul.f32 %v649_v45, %v642_v47  ;;  %v1009_v50 = vpop.f32.mrb[1].mxu1 }
 0x361   : > { %v645_v51 = vpop.f32.mrb[2].mxu1 }
 0x362   : > { %v656_v52 = vadd.f32 %v654_v49, %v650_v48  ;;  %v651_v53 = vmul.f32 %v649_v45, %v645_v51  ;;  %v1010_v55 = vpop.f32.mrb[3].mxu1 }
 0x364   : > { %v658_v56 = vadd.f32 %v656_v52, %v1697_v19  ;;  %v657_v57 = vadd.f32 %v655_v54, %v651_v53  ;;  %667 = sbr.rel (%p921_p2) target bundleno = 1101 (0x44d), region = 76 }
 0x366   : > { %v660_v58 = vmax.f32 %v658_v56, 0.0  ;;  %v659_v59 = vadd.f32 %v657_v57, %v1699_v20 }
 0x368   : > { %662 = vst [vmem:[#allocation2] sm:$0xff] %v660_v58  ;;  %v661_v60 = vmax.f32 %v659_v59, 0.0 }
 0x36a   : > { %663 = vst [vmem:[#allocation2 + $0x8] sm:$0xff] %v661_v60 }
 0x36f   : > { %v668_v6 = vld [vmem:[#allocation2] sm:$0xff] }
 0x371   : > { %v669_v7 = vld [vmem:[#allocation2 + $0x8] sm:$0xff] }
 0x372   : > { %v670_v8 = vpack.c.bf16 %v669_v7, %v668_v6 }
 0x374   : > { %1028 = vmatmul.mubr.bf16.vlgmr.msra.gmra.mrb[0].mxu0 %v670_v8 }
 0x447   : > { %v776_v10 = vpop.f32.mrb[0].mxu0 }
 0x448   : > { %v777_v11 = vadd.f32 %v922_v9, %v776_v10  ;;  %v1029_v12 = vpop.f32.mrb[1].mxu0 }
 0x449   : > { %v779_v13 = vpop.f32.mrb[2].mxu0 }
 0x44a   : > { %783 = vst [vmem:[#allocation15] sm:$0xff] %v777_v11  ;;  %v780_v14 = vadd.f32 %v922_v9, %v779_v13  ;;  %v1030_v15 = vpop.f32.mrb[3].mxu0 }
 0x44c   : > { %784 = vst [vmem:[#allocation15 + $0x8] sm:$0xff] %v780_v14 }
 0x44d PF: > { %p1079_p3 = scmp.eq.s32.totalorder %s1480_s0, 1  ;;  %s1401_s28 = smov [#allocation15]  }
 0x44e   : > { %s791_s29 = sshll.u32 %s1401_s28, 4  ;;  %s792_s29 = int_to_ptr.vmem [resolvable:$true] %s791_s29 }
 0x44f   : > { %s1307_s9 = scalar_lea.vmem %s792_s29, 256  ;;  %p1314_p5 = scmp.lt.s32.totalorder %s792_s29, %s792_s29 }
 0x450   : > { %p1308_p6 = scmp.ne.s32.totalorder %s792_s29, %s1307_s9  ;;  %p1315_p10 = scmp.lt.s32.totalorder %s1307_s9, %s1307_s9 }
 0x452   : > { %p1309_p12 = pnand %p1308_p6, %p1079_p3  ;;  %p1316_p4 = por %p1315_p10, %p1314_p5 }
 0x454   : > { %p1310_p0 = pneg %p1309_p12 }
 0x456   : > { %p1317_p7 = pnand %p1316_p4, %p1310_p0 }
 0x458   : > { %1320 = shalt.err (!%p1317_p7)
}
 0x459   : > { %s1321_s10 = scalar_lea.hbm %s1762_s8, 256 }
 0x45a   : > { %p1322_p13 = scmp.ne.s32.totalorder %s1762_s8, %s1321_s10  ;;  %p1327_p9 = scmp.lt.u32.totalorder %s1321_s10, %s1762_s8 }
 0x45c   : > { %p1323_p11 = pnand %p1322_p13, %p1079_p3 }
 0x45e   : > { %p1324_p8 = pneg %p1323_p11 }
 0x460   : > { %p1329_p1 = pnand %p1327_p9, %p1324_p8 }
 0x462   : > { %1332 = shalt.err (!%p1329_p1)
}
 0x463   : > { %s1402_s20 = smov 128   ;;  %s1403_s24 = smov 8  }
 0x464   : > { %1050 = dma.vmem_to_hbm [thread:$0]  (%p1079_p3), %s792_s29, 256, %s1762_s8, [#allocation8], %s1402_s20, %s1402_s20, %s1403_s24  }
 0x465   : > { %1368 = dma.done.wait (%p1079_p3), [#allocation8], 256  }
 0x466   : > { %1370 = vsyncadd (%p1079_p3), [#allocation8], 4294967040 }
 0x467 PF: > { %p25_p2 = scmp.ge.s32.totalorder %s1613_s11, 4   ;;  %s1780_s15 = smov %s1377_s16 }
 0x468   : > { %s1781_s16 = smov %s1381_s17  ;;  %s1782_s17 = smov %s1624_s26 }
 0x469   : > { %s1783_s18 = smov %s1613_s11  ;;  %27 = sbr.rel (!%p25_p2) target bundleno = 18 (0x12), region = 110 }
 0x470   :  { %807 = vsyncpa [#allocation7], 1 }
 0x471   :  { %809 = vsyncpa [#allocation7 + $0x1], 1 }
 0x472   :  { %810 = vsyncpa [#allocation10], 1 }
 0x473   :  { %811 = vsyncpa [#allocation13], 1 }
 0x474   :  { %813 = vsyncpa [#allocation13 + $0x1], 1 }
 0x475   :  { %814 = vsyncpa [#allocation8], 1 }
 0x476   :  { %816 = vsyncpa [#allocation8 + $0x1], 1 }

</bundles_post_ra>
